<compile_context>
chip_gen: v7x
topology: tpu7x:2x2x1
jax: 0.10.0
libtpu: 0.0.40
codegen_flags: <defaults>
</compile_context>

<pallas_src>
import functools

import jax
import jax.numpy as jnp
from jax.experimental import pallas as pl
from jax.experimental.pallas import tpu as pltpu


def _round_up(x, m):
    return (x + m - 1) // m * m


def _vmem_limit_bytes():
    # Raise the scoped VMEM limit (defaults: 16/32 MiB) but keep headroom under
    # the physical capacity of the current generation (64 MiB on v7x).
    try:
        cap = pltpu.get_tpu_info().vmem_capacity_bytes
        return int(min(cap * 3 // 4, 96 << 20))
    except Exception:
        return 48 << 20  # safe on v5e / v6e / v7x


# ----------------------------- Pallas kernels ---------------------------------
def gcn_relu_kernel(a_ref, x_ref, w_ref, b_ref, o_ref):
    """Hidden GCN layer, one row tile: ReLU((A_blk @ X) @ W + b)."""
    ax = jnp.dot(a_ref[...], x_ref[...], preferred_element_type=jnp.float32)
    h = jnp.dot(ax.astype(jnp.bfloat16), w_ref[...],
                preferred_element_type=jnp.float32) + b_ref[...]
    o_ref[...] = jnp.maximum(h, 0.0).astype(o_ref.dtype)


def gcn_logsoftmax_kernel(a_ref, h_ref, w_ref, b_ref, o_ref, *, valid_cols):
    """Output GCN layer, one row tile: log_softmax((A_blk @ H) @ W + b, axis=1).

    The class axis is zero-padded to a lane-dense width; padded columns are
    masked out of the max / sum reductions so the softmax matches unpadded math.
    """
    ah = jnp.dot(a_ref[...], h_ref[...], preferred_element_type=jnp.float32)
    z = jnp.dot(ah.astype(jnp.bfloat16), w_ref[...],
                preferred_element_type=jnp.float32) + b_ref[...]
    col = jax.lax.broadcasted_iota(jnp.int32, z.shape, 1)
    valid = col < valid_cols
    z_m = jnp.where(valid, z, jnp.float32(-1e30))
    m = jnp.max(z_m, axis=1, keepdims=True)
    e = jnp.where(valid, jnp.exp(z_m - m), 0.0)
    lse = m + jnp.log(jnp.sum(e, axis=1, keepdims=True))
    o_ref[...] = (z - lse).astype(o_ref.dtype)  # padded cols sliced off by caller


# ------------------------------ layer wrapper ----------------------------------
def _gcn_layer(kernel, a_p, x_p, w_p, b_p, *, out_dtype, tm, transcendentals):
    n_pad = a_p.shape[0]
    k_dim = x_p.shape[1]
    c_out = w_p.shape[1]
    grid = (n_pad // tm,)

    flops = 2 * n_pad * n_pad * k_dim + 2 * n_pad * k_dim * c_out
    bytes_accessed = (
        a_p.size * a_p.dtype.itemsize
        + x_p.size * x_p.dtype.itemsize
        + w_p.size * w_p.dtype.itemsize
        + b_p.size * b_p.dtype.itemsize
        + n_pad * c_out * jnp.dtype(out_dtype).itemsize
    )

    return pl.pallas_call(
        kernel,
        out_shape=jax.ShapeDtypeStruct((n_pad, c_out), out_dtype),
        grid=grid,
        in_specs=[
            pl.BlockSpec((tm, n_pad), lambda i: (i, 0)),   # A_hat row slab (streamed)
            pl.BlockSpec(x_p.shape, lambda i: (0, 0)),     # features (resident)
            pl.BlockSpec(w_p.shape, lambda i: (0, 0)),     # weight   (resident)
            pl.BlockSpec(b_p.shape, lambda i: (0, 0)),     # bias     (resident)
        ],
        out_specs=pl.BlockSpec((tm, c_out), lambda i: (i, 0)),
        compiler_params=pltpu.CompilerParams(
            dimension_semantics=("parallel",),
            vmem_limit_bytes=_vmem_limit_bytes(),
        ),
        cost_estimate=pl.CostEstimate(
            flops=flops,
            transcendentals=transcendentals,
            bytes_accessed=bytes_accessed,
        ),
    )(a_p, x_p, w_p, b_p)


# ------------------------------ JAX glue ---------------------------------------
def gcn_norm_dense(edge_index, num_nodes):
    """Dense D^-1/2 (A + I) D^-1/2, matching PyG GCNConv's gcn_norm semantics."""
    src, dst = edge_index[0], edge_index[1]
    loop = jnp.arange(num_nodes, dtype=edge_index.dtype)
    src = jnp.concatenate([src, loop])
    dst = jnp.concatenate([dst, loop])
    adj = jnp.zeros((num_nodes, num_nodes), jnp.float32).at[dst, src].add(1.0)
    deg = adj.sum(axis=1)
    dinv = jnp.where(deg > 0, jax.lax.rsqrt(jnp.maximum(deg, 1e-12)), 0.0)
    return dinv[:, None] * adj * dinv[None, :]


def gnn_forward(x, a_hat, w1, b1, w2, b2, *, row_tile=256):
    n, f = x.shape
    h_dim = w1.shape[1]
    o_dim = w2.shape[1]

    # Row tile: multiple of 128 (lane-dense A slabs), capped at `row_tile`;
    # pad N up to a multiple of the tile.
    tm = min(row_tile, _round_up(max(n, 128), 128))
    n_pad = _round_up(n, tm)
    f_pad = _round_up(f, 128)      # lane-dense feature dims
    h_pad = _round_up(h_dim, 128)
    o_pad = _round_up(o_dim, 128)

    def pad2(arr, rows, cols):
        r, c = arr.shape
        return jnp.pad(arr, ((0, rows - r), (0, cols - c)))

    a_p = pad2(a_hat, n_pad, n_pad).astype(jnp.bfloat16)
    x_p = pad2(x, n_pad, f_pad).astype(jnp.bfloat16)
    w1_p = pad2(w1, f_pad, h_pad).astype(jnp.bfloat16)
    w2_p = pad2(w2, h_pad, o_pad).astype(jnp.bfloat16)
    b1_p = jnp.pad(b1, (0, h_pad - h_dim)).reshape(1, h_pad).astype(jnp.float32)
    b2_p = jnp.pad(b2, (0, o_pad - o_dim)).reshape(1, o_pad).astype(jnp.float32)

    # Layer 1: ReLU(A_hat @ X @ W1 + b1)   (kept bf16 for the next layer's MXU pass)
    h = _gcn_layer(gcn_relu_kernel, a_p, x_p, w1_p, b1_p,
                   out_dtype=jnp.bfloat16, tm=tm, transcendentals=0)

    # Layer 2: log_softmax(A_hat @ H @ W2 + b2, axis=1) with padded-lane masking.
    out = _gcn_layer(
        functools.partial(gcn_logsoftmax_kernel, valid_cols=o_dim),
        a_p, h, w2_p, b2_p,
        out_dtype=jnp.float32, tm=tm, transcendentals=n_pad * o_pad,
    )
    return out[:n, :o_dim]


# --------------------------------- main -----------------------------------------
if __name__ == "__main__":
    # Small shapes consistent with the module: N nodes, input_dim -> hidden -> output.
    N, INPUT_DIM, HIDDEN_DIM, OUTPUT_DIM = 16, 8, 32, 4

    key = jax.random.PRNGKey(0)
    k_x, k_w1, k_w2 = jax.random.split(key, 3)

    # Node features.
    x = jax.random.normal(k_x, (N, INPUT_DIM), dtype=jnp.float32)

    # Undirected ring graph: edges i <-> (i+1) % N.
    src = jnp.arange(N, dtype=jnp.int32)
    dst = (src + 1) % N
    edge_index = jnp.stack(
        [jnp.concatenate([src, dst]), jnp.concatenate([dst, src])], axis=0
    )  # (2, 2N)

    # Deterministic parameter init (glorot-like scaling, zero bias — like PyG defaults).
    w1 = jax.random.normal(k_w1, (INPUT_DIM, HIDDEN_DIM), jnp.float32) * (
        1.0 / jnp.sqrt(INPUT_DIM)
    )
    b1 = jnp.zeros((HIDDEN_DIM,), jnp.float32)
    w2 = jax.random.normal(k_w2, (HIDDEN_DIM, OUTPUT_DIM), jnp.float32) * (
        1.0 / jnp.sqrt(HIDDEN_DIM)
    )
    b2 = jnp.zeros((OUTPUT_DIM,), jnp.float32)

    # Graph is static: build the normalized adjacency ONCE (hoisted out of forward).
    a_hat = gcn_norm_dense(edge_index, N)

    out = jax.jit(gnn_forward)(x, a_hat, w1, b1, w2, b2)
    jax.block_until_ready(out)

    assert out.shape == (N, OUTPUT_DIM)

    # Sanity 1: log_softmax rows exponentiate-and-sum to ~1.
    row_sums = jnp.sum(jnp.exp(out), axis=1)
    assert bool(jnp.all(jnp.abs(row_sums - 1.0) < 1e-4))

    # Sanity 2: matches a pure-JAX f32 reference within bf16 tolerance.
    ref_h = jnp.maximum(a_hat @ (x @ w1) + b1, 0.0)
    ref_z = a_hat @ (ref_h @ w2) + b2
    ref = ref_z - jax.scipy.special.logsumexp(ref_z, axis=1, keepdims=True)
    assert bool(jnp.max(jnp.abs(out - ref)) < 1e-1)

    print("KERNEL_OK")
</pallas_src>

<mosaic_0001>
module attributes {stable_mosaic.version = 11 : i64} {
  func.func @gcn_relu_kernel(%arg0: i32, %arg1: memref<128x128xbf16, #tpu.memory_space<vmem>>, %arg2: memref<128x128xbf16, #tpu.memory_space<vmem>>, %arg3: memref<128x128xbf16, #tpu.memory_space<vmem>>, %arg4: memref<1x128xf32, #tpu.memory_space<vmem>>, %arg5: memref<128x128xbf16, #tpu.memory_space<vmem>>) attributes {dimension_semantics = [#tpu.dimension_semantics<parallel>], iteration_bounds = array<i64: 1>, scalar_prefetch = 0 : i64, scratch_operands = 0 : i64, tpu.core_type = #tpu.core_type<tc>, window_params = [{transform_indices = @transform_0, window_bounds = array<i64: 128, 128>}, {pipeline_mode = #tpu.pipeline_mode<synchronous>, transform_indices = @transform_1, window_bounds = array<i64: 128, 128>}, {pipeline_mode = #tpu.pipeline_mode<synchronous>, transform_indices = @transform_2, window_bounds = array<i64: 128, 128>}, {pipeline_mode = #tpu.pipeline_mode<synchronous>, transform_indices = @transform_3, window_bounds = array<i64: 1, 128>}, {transform_indices = @transform_4, window_bounds = array<i64: 128, 128>}]} {
    %c0 = arith.constant 0 : index
    %c0_0 = arith.constant 0 : index
    %0 = vector.load %arg1[%c0, %c0_0] : memref<128x128xbf16, #tpu.memory_space<vmem>>, vector<128x128xbf16>
    %c0_1 = arith.constant 0 : index
    %c0_2 = arith.constant 0 : index
    %1 = vector.load %arg2[%c0_1, %c0_2] : memref<128x128xbf16, #tpu.memory_space<vmem>>, vector<128x128xbf16>
    %cst = arith.constant dense<0.000000e+00> : vector<128x128xf32>
    %2 = tpu.matmul %0, %1, %cst {dimension_numbers = #tpu.dot_dimension_numbers<[1], [0], [0], [1], [0, 0, 1, 1], [], []>} : vector<128x128xbf16>, vector<128x128xbf16>, vector<128x128xf32> -> vector<128x128xf32>
    %3 = arith.truncf %2 : vector<128x128xf32> to vector<128x128xbf16>
    %c0_3 = arith.constant 0 : index
    %c0_4 = arith.constant 0 : index
    %4 = vector.load %arg3[%c0_3, %c0_4] : memref<128x128xbf16, #tpu.memory_space<vmem>>, vector<128x128xbf16>
    %cst_5 = arith.constant dense<0.000000e+00> : vector<128x128xf32>
    %5 = tpu.matmul %3, %4, %cst_5 {dimension_numbers = #tpu.dot_dimension_numbers<[1], [0], [0], [1], [0, 0, 1, 1], [], []>} : vector<128x128xbf16>, vector<128x128xbf16>, vector<128x128xf32> -> vector<128x128xf32>
    %c0_6 = arith.constant 0 : index
    %c0_7 = arith.constant 0 : index
    %6 = vector.load %arg4[%c0_6, %c0_7] : memref<1x128xf32, #tpu.memory_space<vmem>>, vector<1x128xf32>
    %7 = vector.broadcast %6 : vector<1x128xf32> to vector<128x128xf32>
    %8 = arith.addf %5, %7 : vector<128x128xf32>
    %cst_8 = arith.constant 0.000000e+00 : f32
    %9 = vector.broadcast %cst_8 : f32 to vector<128x128xf32>
    %10 = arith.maximumf %8, %9 : vector<128x128xf32>
    %11 = arith.truncf %10 : vector<128x128xf32> to vector<128x128xbf16>
    %c0_9 = arith.constant 0 : index
    %c0_10 = arith.constant 0 : index
    %12 = vector.load %arg5[%c0_9, %c0_10] : memref<128x128xbf16, #tpu.memory_space<vmem>>, vector<128x128xbf16>
    tpu.vector_store %arg5[%c0_9, %c0_10], %11 {strides = array<i32>} : memref<128x128xbf16, #tpu.memory_space<vmem>>, vector<128x128xbf16>,
    return
  }
  func.func @transform_0(%arg0: i32) -> (i32, i32) {
    %c0_i32 = arith.constant 0 : i32
    %c0_i32_0 = arith.constant 0 : i32
    return %arg0, %c0_i32 : i32, i32
  }
  func.func @transform_1(%arg0: i32) -> (i32, i32) {
    %c0_i32 = arith.constant 0 : i32
    %c0_i32_0 = arith.constant 0 : i32
    %c0_i32_1 = arith.constant 0 : i32
    return %c0_i32, %c0_i32_0 : i32, i32
  }
  func.func @transform_2(%arg0: i32) -> (i32, i32) {
    %c0_i32 = arith.constant 0 : i32
    %c0_i32_0 = arith.constant 0 : i32
    %c0_i32_1 = arith.constant 0 : i32
    return %c0_i32, %c0_i32_0 : i32, i32
  }
  func.func @transform_3(%arg0: i32) -> (i32, i32) {
    %c0_i32 = arith.constant 0 : i32
    %c0_i32_0 = arith.constant 0 : i32
    %c0_i32_1 = arith.constant 0 : i32
    return %c0_i32, %c0_i32_0 : i32, i32
  }
  func.func @transform_4(%arg0: i32) -> (i32, i32) {
    %c0_i32 = arith.constant 0 : i32
    %c0_i32_0 = arith.constant 0 : i32
    return %arg0, %c0_i32 : i32, i32
  }
}

module attributes {stable_mosaic.version = 11 : i64} {
  func.func @gcn_logsoftmax_kernel(%arg0: i32, %arg1: memref<128x128xbf16, #tpu.memory_space<vmem>>, %arg2: memref<128x128xbf16, #tpu.memory_space<vmem>>, %arg3: memref<128x128xbf16, #tpu.memory_space<vmem>>, %arg4: memref<1x128xf32, #tpu.memory_space<vmem>>, %arg5: memref<128x128xf32, #tpu.memory_space<vmem>>) attributes {dimension_semantics = [#tpu.dimension_semantics<parallel>], iteration_bounds = array<i64: 1>, scalar_prefetch = 0 : i64, scratch_operands = 0 : i64, tpu.core_type = #tpu.core_type<tc>, window_params = [{transform_indices = @transform_0, window_bounds = array<i64: 128, 128>}, {pipeline_mode = #tpu.pipeline_mode<synchronous>, transform_indices = @transform_1, window_bounds = array<i64: 128, 128>}, {pipeline_mode = #tpu.pipeline_mode<synchronous>, transform_indices = @transform_2, window_bounds = array<i64: 128, 128>}, {pipeline_mode = #tpu.pipeline_mode<synchronous>, transform_indices = @transform_3, window_bounds = array<i64: 1, 128>}, {transform_indices = @transform_4, window_bounds = array<i64: 128, 128>}]} {
    %c0 = arith.constant 0 : index
    %c0_0 = arith.constant 0 : index
    %0 = vector.load %arg1[%c0, %c0_0] : memref<128x128xbf16, #tpu.memory_space<vmem>>, vector<128x128xbf16>
    %c0_1 = arith.constant 0 : index
    %c0_2 = arith.constant 0 : index
    %1 = vector.load %arg2[%c0_1, %c0_2] : memref<128x128xbf16, #tpu.memory_space<vmem>>, vector<128x128xbf16>
    %cst = arith.constant dense<0.000000e+00> : vector<128x128xf32>
    %2 = tpu.matmul %0, %1, %cst {dimension_numbers = #tpu.dot_dimension_numbers<[1], [0], [0], [1], [0, 0, 1, 1], [], []>} : vector<128x128xbf16>, vector<128x128xbf16>, vector<128x128xf32> -> vector<128x128xf32>
    %3 = arith.truncf %2 : vector<128x128xf32> to vector<128x128xbf16>
    %c0_3 = arith.constant 0 : index
    %c0_4 = arith.constant 0 : index
    %4 = vector.load %arg3[%c0_3, %c0_4] : memref<128x128xbf16, #tpu.memory_space<vmem>>, vector<128x128xbf16>
    %cst_5 = arith.constant dense<0.000000e+00> : vector<128x128xf32>
    %5 = tpu.matmul %3, %4, %cst_5 {dimension_numbers = #tpu.dot_dimension_numbers<[1], [0], [0], [1], [0, 0, 1, 1], [], []>} : vector<128x128xbf16>, vector<128x128xbf16>, vector<128x128xf32> -> vector<128x128xf32>
    %c0_6 = arith.constant 0 : index
    %c0_7 = arith.constant 0 : index
    %6 = vector.load %arg4[%c0_6, %c0_7] : memref<1x128xf32, #tpu.memory_space<vmem>>, vector<1x128xf32>
    %7 = vector.broadcast %6 : vector<1x128xf32> to vector<128x128xf32>
    %8 = arith.addf %5, %7 : vector<128x128xf32>
    %9 = tpu.iota {dimensions = array<i32: 1>} : vector<128x128xi32>
    %c4_i32 = arith.constant 4 : i32
    %10 = vector.broadcast %c4_i32 : i32 to vector<128x128xi32>
    %11 = arith.cmpi slt, %9, %10 : vector<128x128xi32>
    %cst_8 = arith.constant -1.000000e+30 : f32
    %12 = vector.broadcast %cst_8 : f32 to vector<128x128xf32>
    %13 = arith.select %11, %8, %12 : vector<128x128xi1>, vector<128x128xf32>
    %cst_9 = arith.constant dense<0xFF800000> : vector<128xf32>
    %14 = vector.multi_reduction <maximumf>, %13, %cst_9 [1] : vector<128x128xf32> to vector<128xf32>
    %15 = vector.shape_cast %14 : vector<128xf32> to vector<128x1xf32>
    %16 = vector.broadcast %15 : vector<128x1xf32> to vector<128x128xf32>
    %17 = arith.subf %13, %16 : vector<128x128xf32>
    %18 = math.exp %17 : vector<128x128xf32>
    %cst_10 = arith.constant 0.000000e+00 : f32
    %19 = vector.broadcast %cst_10 : f32 to vector<128x128xf32>
    %20 = arith.select %11, %18, %19 : vector<128x128xi1>, vector<128x128xf32>
    %cst_11 = arith.constant dense<0.000000e+00> : vector<128xf32>
    %21 = vector.multi_reduction <add>, %20, %cst_11 [1] : vector<128x128xf32> to vector<128xf32>
    %22 = vector.shape_cast %21 : vector<128xf32> to vector<128x1xf32>
    %23 = math.log %22 : vector<128x1xf32>
    %24 = arith.addf %15, %23 : vector<128x1xf32>
    %25 = vector.broadcast %24 : vector<128x1xf32> to vector<128x128xf32>
    %26 = arith.subf %8, %25 : vector<128x128xf32>
    %c0_12 = arith.constant 0 : index
    %c0_13 = arith.constant 0 : index
    %27 = vector.load %arg5[%c0_12, %c0_13] : memref<128x128xf32, #tpu.memory_space<vmem>>, vector<128x128xf32>
    tpu.vector_store %arg5[%c0_12, %c0_13], %26 {strides = array<i32>} : memref<128x128xf32, #tpu.memory_space<vmem>>, vector<128x128xf32>,
    return
  }
  func.func @transform_0(%arg0: i32) -> (i32, i32) {
    %c0_i32 = arith.constant 0 : i32
    %c0_i32_0 = arith.constant 0 : i32
    return %arg0, %c0_i32 : i32, i32
  }
  func.func @transform_1(%arg0: i32) -> (i32, i32) {
    %c0_i32 = arith.constant 0 : i32
    %c0_i32_0 = arith.constant 0 : i32
    %c0_i32_1 = arith.constant 0 : i32
    return %c0_i32, %c0_i32_0 : i32, i32
  }
  func.func @transform_2(%arg0: i32) -> (i32, i32) {
    %c0_i32 = arith.constant 0 : i32
    %c0_i32_0 = arith.constant 0 : i32
    %c0_i32_1 = arith.constant 0 : i32
    return %c0_i32, %c0_i32_0 : i32, i32
  }
  func.func @transform_3(%arg0: i32) -> (i32, i32) {
    %c0_i32 = arith.constant 0 : i32
    %c0_i32_0 = arith.constant 0 : i32
    %c0_i32_1 = arith.constant 0 : i32
    return %c0_i32, %c0_i32_0 : i32, i32
  }
  func.func @transform_4(%arg0: i32) -> (i32, i32) {
    %c0_i32 = arith.constant 0 : i32
    %c0_i32_0 = arith.constant 0 : i32
    return %arg0, %c0_i32 : i32, i32
  }
}

</mosaic_0001>

<bundles_post_ra>
// kernel: gnn_forward.2
= control target key start
LH: loop header
LB: loop body
LE: loop exit
PB: predicated region body
PF: predicated region fallthrough
CT: control target
= control target key end

     0   :  { %s867_s1 = inlined_call_operand.vmem [shape: bf16[128,128], index: 1, kind: input, shape index: {}]   ;;  %s868_s0 = inlined_call_operand.vmem [shape: bf16[128,128], index: 0, kind: input, shape index: {}]   ;;  %s869_s2 = inlined_call_operand.vmem [shape: bf16[128,128], index: 2, kind: input, shape index: {}]   ;;  %s870_s3 = inlined_call_operand.vmem [shape: f32[1,128], index: 3, kind: input, shape index: {}]   ;;  %s871_s4 = inlined_call_operand.vmem [shape: bf16[128,128], index: 4, kind: output, shape index: {}]  }
   0x1   :  { %v719_v0 = vld [vmem:[%s867_s1] sm:$0xff]   ;;  %v720_v1 = vld [vmem:[%s867_s1 + $0x8] sm:$0xff]   ;;  %v721_v2 = vld [vmem:[%s867_s1 + $0x10] sm:$0xff]  }
   0x2   :  { %655 = vmatprep.subr.bf16.mxu0 %v719_v0  ;;  %v722_v3 = vld [vmem:[%s867_s1 + $0x18] sm:$0xff]   ;;  %v727_v4 = vld [vmem:[%s868_s0] sm:$0xff]   ;;  %v724_v6 = vld [vmem:[%s867_s1 + $0x28] sm:$0xff]  }
   0x3   :  { %656 = vmatpush3.bf16.msra.mxu0 %v719_v0  ;;  %671 = vmatprep.mubr.bf16.mxu0 %v727_v4  ;;  %v723_v5 = vld [vmem:[%s867_s1 + $0x20] sm:$0xff]   ;;  %v736_v8 = vld [vmem:[%s869_s2 + $0x8] sm:$0xff]   ;;  %v725_v9 = vld [vmem:[%s867_s1 + $0x30] sm:$0xff]  }
   0x4   :  { %657 = vmatprep.subr.bf16.mxu0 %v720_v1  ;;  %v735_v7 = vld [vmem:[%s869_s2] sm:$0xff]   ;;  %v737_v10 = vld [vmem:[%s869_s2 + $0x10] sm:$0xff]   ;;  %v726_v11 = vld [vmem:[%s867_s1 + $0x38] sm:$0xff]  }
   0x5   :  { %687 = vmatprep.subr.bf16.mxu1 %v735_v7  ;;  %v738_v12 = vld [vmem:[%s869_s2 + $0x18] sm:$0xff]   ;;  %v739_v13 = vld [vmem:[%s869_s2 + $0x20] sm:$0xff]   ;;  %v728_v14 = vld [vmem:[%s868_s0 + $0x8] sm:$0xff]  }
   0x6   :  { %688 = vmatpush3.bf16.msra.mxu1 %v735_v7  ;;  %v729_v15 = vld [vmem:[%s868_s0 + $0x10] sm:$0xff]   ;;  %v740_v16 = vld [vmem:[%s869_s2 + $0x28] sm:$0xff]   ;;  %v730_v18 = vld [vmem:[%s868_s0 + $0x18] sm:$0xff]  }
   0x7   :  { %658 = vmatpush3.bf16.msra.mxu0 %v720_v1  ;;  %689 = vmatprep.subr.bf16.mxu1 %v736_v8  ;;  %v741_v17 = vld [vmem:[%s869_s2 + $0x30] sm:$0xff]   ;;  %v731_v19 = vld [vmem:[%s868_s0 + $0x20] sm:$0xff]   ;;  %v732_v20 = vld [vmem:[%s868_s0 + $0x28] sm:$0xff]  }
   0x8   :  { %659 = vmatprep.subr.bf16.mxu0 %v721_v2  ;;  %v733_v21 = vld [vmem:[%s868_s0 + $0x30] sm:$0xff]   ;;  %v734_v22 = vld [vmem:[%s868_s0 + $0x38] sm:$0xff]   ;;  %v535_v48 = vld [vmem:[%s870_s3] ss:$0 sm:$0xff] }
   0x9   :  { %v742_v23 = vld [vmem:[%s869_s2 + $0x38] sm:$0xff]  }
   0xa   :  { %690 = vmatpush3.bf16.msra.mxu1 %v736_v8 }
   0xb   :  { %660 = vmatpush3.bf16.msra.mxu0 %v721_v2  ;;  %691 = vmatprep.subr.bf16.mxu1 %v737_v10 }
   0xc   :  { %661 = vmatprep.subr.bf16.mxu0 %v722_v3 }
   0xe   :  { %692 = vmatpush3.bf16.msra.mxu1 %v737_v10 }
   0xf   :  { %662 = vmatpush3.bf16.msra.mxu0 %v722_v3  ;;  %693 = vmatprep.subr.bf16.mxu1 %v738_v12 }
  0x10   :  { %663 = vmatprep.subr.bf16.mxu0 %v723_v5 }
  0x12   :  { %694 = vmatpush3.bf16.msra.mxu1 %v738_v12 }
  0x13   :  { %664 = vmatpush3.bf16.msra.mxu0 %v723_v5  ;;  %695 = vmatprep.subr.bf16.mxu1 %v739_v13 }
  0x14   :  { %665 = vmatprep.subr.bf16.mxu0 %v724_v6 }
  0x16   :  { %696 = vmatpush3.bf16.msra.mxu1 %v739_v13 }
  0x17   :  { %666 = vmatpush3.bf16.msra.mxu0 %v724_v6  ;;  %697 = vmatprep.subr.bf16.mxu1 %v740_v16 }
  0x18   :  { %667 = vmatprep.subr.bf16.mxu0 %v725_v9 }
  0x1a   :  { %698 = vmatpush3.bf16.msra.mxu1 %v740_v16 }
  0x1b   :  { %668 = vmatpush3.bf16.msra.mxu0 %v725_v9  ;;  %699 = vmatprep.subr.bf16.mxu1 %v741_v17 }
  0x1c   :  { %669 = vmatprep.subr.bf16.mxu0 %v726_v11 }
  0x1e   :  { %700 = vmatpush3.bf16.msra.mxu1 %v741_v17 }
  0x1f   :  { %670 = vmatpush3.bf16.msra.mxu0 %v726_v11  ;;  %701 = vmatprep.subr.bf16.mxu1 %v742_v23 }
  0x22   :  { %672 = vmatmul.mubr.bf16.vlgmr.msra.gmra.mrb[0].mxu0 %v728_v14  ;;  %702 = vmatpush3.bf16.msra.mxu1 %v742_v23 }
  0x23   :  { %675 = vmatprep.mubr.bf16.mxu0 %v729_v15 }
  0x2a   :  { %676 = vmatmul.mubr.bf16.gmra.mrb[4].mxu0 %v730_v18 }
  0x2b   :  { %679 = vmatprep.mubr.bf16.mxu0 %v731_v19 }
  0x32   :  { %680 = vmatmul.mubr.bf16.gmra.mrb[8].mxu0 %v732_v20 }
  0x33   :  { %683 = vmatprep.mubr.bf16.mxu0 %v733_v21 }
  0x3a   :  { %684 = vmatmul.mubr.bf16.gmra.mrb[12].mxu0 %v734_v22 }
  0xf5   :  { %v673_v24 = vpop.f32.mrb[0].mxu0 }
  0xf6   :  { %v180_v25 = vpop.f32.mrb[1].mxu0 }
  0xf7   :  { %v674_v26 = vpop.f32.mrb[2].mxu0 }
  0xf8   :  { %v244_v27 = vpack.c.bf16 %v674_v26, %v673_v24  ;;  %v183_v28 = vpop.f32.mrb[3].mxu0 }
  0xf9   :  { %v243_v29 = vpack.c.bf16 %v183_v28, %v180_v25 }
  0xfb   :  { %703 = vmatprep.mubr.bf16.mxu1 %v243_v29 }
  0xfc   :  { %704 = vmatmul.mubr.bf16.vlgmr.msra.gmra.mrb[0].mxu1 %v244_v27 }
  0xfd   :  { %v677_v30 = vpop.f32.mrb[4].mxu0 }
  0xfe   :  { %v196_v31 = vpop.f32.mrb[5].mxu0 }
  0xff   :  { %v678_v32 = vpop.f32.mrb[6].mxu0 }
 0x100   :  { %v246_v33 = vpack.c.bf16 %v678_v32, %v677_v30  ;;  %v199_v34 = vpop.f32.mrb[7].mxu0 }
 0x101   :  { %v245_v35 = vpack.c.bf16 %v199_v34, %v196_v31 }
 0x103   :  { %707 = vmatprep.mubr.bf16.mxu1 %v245_v35 }
 0x104   :  { %708 = vmatmul.mubr.bf16.gmra.mrb[4].mxu1 %v246_v33 }
 0x105   :  { %v681_v36 = vpop.f32.mrb[8].mxu0 }
 0x106   :  { %v212_v37 = vpop.f32.mrb[9].mxu0 }
 0x107   :  { %v682_v38 = vpop.f32.mrb[10].mxu0 }
 0x108   :  { %v248_v39 = vpack.c.bf16 %v682_v38, %v681_v36  ;;  %v215_v40 = vpop.f32.mrb[11].mxu0 }
 0x109   :  { %v247_v41 = vpack.c.bf16 %v215_v40, %v212_v37 }
 0x10b   :  { %711 = vmatprep.mubr.bf16.mxu1 %v247_v41 }
 0x10c   :  { %712 = vmatmul.mubr.bf16.gmra.mrb[8].mxu1 %v248_v39 }
 0x10d   :  { %v685_v42 = vpop.f32.mrb[12].mxu0 }
 0x10e   :  { %v228_v43 = vpop.f32.mrb[13].mxu0 }
 0x10f   :  { %v686_v44 = vpop.f32.mrb[14].mxu0 }
 0x110   :  { %v250_v45 = vpack.c.bf16 %v686_v44, %v685_v42  ;;  %v231_v46 = vpop.f32.mrb[15].mxu0 }
 0x111   :  { %v249_v47 = vpack.c.bf16 %v231_v46, %v228_v43 }
 0x113   :  { %715 = vmatprep.mubr.bf16.mxu1 %v249_v47 }
 0x114   :  { %716 = vmatmul.mubr.bf16.gmra.mrb[12].mxu1 %v250_v45 }
 0x1cf   :  { %v705_v49 = vpop.f32.mrb[0].mxu1 }
 0x1d0   :  { %v365_v50 = vadd.f32 %v705_v49, %v535_v48  ;;  %v356_v51 = vpop.f32.mrb[1].mxu1 }
 0x1d1   :  { %v357_v52 = vadd.f32 %v535_v48, %v356_v51  ;;  %v706_v53 = vpop.f32.mrb[2].mxu1 }
 0x1d2   :  { %v368_v54 = vadd.f32 %v706_v53, %v535_v48  ;;  %v359_v55 = vpop.f32.mrb[3].mxu1  ;;  %v421_v57 = vmax.f32 %v365_v50, 0.0 }
 0x1d3   :  { %v360_v56 = vadd.f32 %v535_v48, %v359_v55  ;;  %v419_v59 = vmax.f32 %v357_v52, 0.0 }
 0x1d4   :  { %v422_v58 = vmax.f32 %v368_v54, 0.0 }
 0x1d5   :  { %v420_v60 = vmax.f32 %v360_v56, 0.0 }
 0x1d6   :  { %v584_v61 = vpack.c.bf16 %v422_v58, %v421_v57 }
 0x1d7   :  { %v579_v62 = vpack.c.bf16 %v420_v60, %v419_v59  ;;  %v709_v63 = vpop.f32.mrb[4].mxu1 }
 0x1d8   :  { %616 = vst [vmem:[%s871_s4 + $0x8] sm:$0xff] %v584_v61   ;;  %v381_v0 = vadd.f32 %v709_v63, %v535_v48  ;;  %v372_v1 = vpop.f32.mrb[5].mxu1 }
 0x1d9   :  { %580 = vst [vmem:[%s871_s4] sm:$0xff] %v579_v62   ;;  %v373_v2 = vadd.f32 %v535_v48, %v372_v1  ;;  %v710_v3 = vpop.f32.mrb[6].mxu1 }
 0x1da   :  { %v384_v4 = vadd.f32 %v710_v3, %v535_v48  ;;  %v375_v5 = vpop.f32.mrb[7].mxu1  ;;  %v425_v7 = vmax.f32 %v381_v0, 0.0 }
 0x1db   :  { %v376_v6 = vadd.f32 %v535_v48, %v375_v5  ;;  %v423_v9 = vmax.f32 %v373_v2, 0.0 }
 0x1dc   :  { %v426_v8 = vmax.f32 %v384_v4, 0.0 }
 0x1dd   :  { %v424_v10 = vmax.f32 %v376_v6, 0.0 }
 0x1de   :  { %v594_v11 = vpack.c.bf16 %v426_v8, %v425_v7 }
 0x1df   :  { %v589_v12 = vpack.c.bf16 %v424_v10, %v423_v9  ;;  %v713_v13 = vpop.f32.mrb[8].mxu1 }
 0x1e0   :  { %618 = vst [vmem:[%s871_s4 + $0x18] sm:$0xff] %v594_v11   ;;  %v397_v14 = vadd.f32 %v713_v13, %v535_v48  ;;  %v388_v15 = vpop.f32.mrb[9].mxu1 }
 0x1e1   :  { %617 = vst [vmem:[%s871_s4 + $0x10] sm:$0xff] %v589_v12   ;;  %v389_v16 = vadd.f32 %v535_v48, %v388_v15  ;;  %v714_v17 = vpop.f32.mrb[10].mxu1 }
 0x1e2   :  { %v400_v18 = vadd.f32 %v714_v17, %v535_v48  ;;  %v391_v19 = vpop.f32.mrb[11].mxu1  ;;  %v429_v21 = vmax.f32 %v397_v14, 0.0 }
 0x1e3   :  { %v392_v20 = vadd.f32 %v535_v48, %v391_v19  ;;  %v427_v23 = vmax.f32 %v389_v16, 0.0 }
 0x1e4   :  { %v430_v22 = vmax.f32 %v400_v18, 0.0 }
 0x1e5   :  { %v428_v24 = vmax.f32 %v392_v20, 0.0 }
 0x1e6   :  { %v604_v25 = vpack.c.bf16 %v430_v22, %v429_v21 }
 0x1e7   :  { %v599_v26 = vpack.c.bf16 %v428_v24, %v427_v23  ;;  %v717_v27 = vpop.f32.mrb[12].mxu1 }
 0x1e8   :  { %620 = vst [vmem:[%s871_s4 + $0x28] sm:$0xff] %v604_v25   ;;  %v413_v28 = vadd.f32 %v717_v27, %v535_v48  ;;  %v404_v29 = vpop.f32.mrb[13].mxu1 }
 0x1e9   :  { %619 = vst [vmem:[%s871_s4 + $0x20] sm:$0xff] %v599_v26   ;;  %v405_v30 = vadd.f32 %v535_v48, %v404_v29  ;;  %v718_v31 = vpop.f32.mrb[14].mxu1 }
 0x1ea   :  { %v416_v32 = vadd.f32 %v718_v31, %v535_v48  ;;  %v407_v33 = vpop.f32.mrb[15].mxu1  ;;  %v433_v35 = vmax.f32 %v413_v28, 0.0 }
 0x1eb   :  { %v408_v34 = vadd.f32 %v535_v48, %v407_v33  ;;  %v431_v37 = vmax.f32 %v405_v30, 0.0 }
 0x1ec   :  { %v434_v36 = vmax.f32 %v416_v32, 0.0 }
 0x1ed   :  { %v432_v38 = vmax.f32 %v408_v34, 0.0 }
 0x1ee   :  { %v614_v39 = vpack.c.bf16 %v434_v36, %v433_v35 }
 0x1ef   :  { %v609_v40 = vpack.c.bf16 %v432_v38, %v431_v37 }
 0x1f0   :  { %622 = vst [vmem:[%s871_s4 + $0x38] sm:$0xff] %v614_v39  }
 0x1f1   :  { %621 = vst [vmem:[%s871_s4 + $0x30] sm:$0xff] %v609_v40  }

// kernel: gnn_forward.3
= control target key start
LH: loop header
LB: loop body
LE: loop exit
PB: predicated region body
PF: predicated region fallthrough
CT: control target
= control target key end

     0   :  { %v419_v48 = vlaneseq  ;;  %s1246_s1 = inlined_call_operand.vmem [shape: bf16[128,128], index: 1, kind: input, shape index: {}]   ;;  %s1247_s0 = inlined_call_operand.vmem [shape: bf16[128,128], index: 0, kind: input, shape index: {}]   ;;  %s1248_s2 = inlined_call_operand.vmem [shape: bf16[128,128], index: 2, kind: input, shape index: {}]   ;;  %s1249_s3 = inlined_call_operand.vmem [shape: f32[1,128], index: 3, kind: input, shape index: {}]   ;;  %s1250_s4 = inlined_call_operand.vmem [shape: f32[128,128], index: 4, kind: output, shape index: {}]  }
   0x1   :  { %v771_v0 = vld [vmem:[%s1246_s1] sm:$0xff]   ;;  %v772_v1 = vld [vmem:[%s1246_s1 + $0x8] sm:$0xff]   ;;  %v773_v2 = vld [vmem:[%s1246_s1 + $0x10] sm:$0xff]  }
   0x2   :  { %707 = vmatprep.subr.bf16.mxu0 %v771_v0  ;;  %v774_v3 = vld [vmem:[%s1246_s1 + $0x18] sm:$0xff]   ;;  %v779_v4 = vld [vmem:[%s1247_s0] sm:$0xff]   ;;  %v776_v6 = vld [vmem:[%s1246_s1 + $0x28] sm:$0xff]   ;;  %v956_v49 = vand.u32 127, %v419_v48 }
   0x3   :  { %708 = vmatpush3.bf16.msra.mxu0 %v771_v0  ;;  %723 = vmatprep.mubr.bf16.mxu0 %v779_v4  ;;  %v775_v5 = vld [vmem:[%s1246_s1 + $0x20] sm:$0xff]   ;;  %v788_v8 = vld [vmem:[%s1248_s2 + $0x8] sm:$0xff]   ;;  %v777_v9 = vld [vmem:[%s1246_s1 + $0x30] sm:$0xff]  }
   0x4   :  { %709 = vmatprep.subr.bf16.mxu0 %v772_v1  ;;  %v787_v7 = vld [vmem:[%s1248_s2] sm:$0xff]   ;;  %v789_v10 = vld [vmem:[%s1248_s2 + $0x10] sm:$0xff]   ;;  %v778_v11 = vld [vmem:[%s1246_s1 + $0x38] sm:$0xff]   ;;  %vm421_vm0 = vcmp.lt.s32.totalorder %v956_v49, 4 }
   0x5   :  { %739 = vmatprep.subr.bf16.mxu1 %v787_v7  ;;  %v790_v12 = vld [vmem:[%s1248_s2 + $0x18] sm:$0xff]   ;;  %v791_v13 = vld [vmem:[%s1248_s2 + $0x20] sm:$0xff]   ;;  %v780_v14 = vld [vmem:[%s1247_s0 + $0x8] sm:$0xff]  }
   0x6   :  { %740 = vmatpush3.bf16.msra.mxu1 %v787_v7  ;;  %v781_v15 = vld [vmem:[%s1247_s0 + $0x10] sm:$0xff]   ;;  %v792_v16 = vld [vmem:[%s1248_s2 + $0x28] sm:$0xff]   ;;  %v782_v18 = vld [vmem:[%s1247_s0 + $0x18] sm:$0xff]  }
   0x7   :  { %710 = vmatpush3.bf16.msra.mxu0 %v772_v1  ;;  %741 = vmatprep.subr.bf16.mxu1 %v788_v8  ;;  %v793_v17 = vld [vmem:[%s1248_s2 + $0x30] sm:$0xff]   ;;  %v783_v19 = vld [vmem:[%s1247_s0 + $0x20] sm:$0xff]   ;;  %v784_v20 = vld [vmem:[%s1247_s0 + $0x28] sm:$0xff]  }
   0x8   :  { %711 = vmatprep.subr.bf16.mxu0 %v773_v2  ;;  %v785_v21 = vld [vmem:[%s1247_s0 + $0x30] sm:$0xff]   ;;  %v786_v22 = vld [vmem:[%s1247_s0 + $0x38] sm:$0xff]   ;;  %v666_v50 = vld [vmem:[%s1249_s3] ss:$0 sm:$0xff] }
   0x9   :  { %v794_v23 = vld [vmem:[%s1248_s2 + $0x38] sm:$0xff]  }
   0xa   :  { %742 = vmatpush3.bf16.msra.mxu1 %v788_v8 }
   0xb   :  { %712 = vmatpush3.bf16.msra.mxu0 %v773_v2  ;;  %743 = vmatprep.subr.bf16.mxu1 %v789_v10 }
   0xc   :  { %713 = vmatprep.subr.bf16.mxu0 %v774_v3 }
   0xe   :  { %744 = vmatpush3.bf16.msra.mxu1 %v789_v10 }
   0xf   :  { %714 = vmatpush3.bf16.msra.mxu0 %v774_v3  ;;  %745 = vmatprep.subr.bf16.mxu1 %v790_v12 }
  0x10   :  { %715 = vmatprep.subr.bf16.mxu0 %v775_v5 }
  0x12   :  { %746 = vmatpush3.bf16.msra.mxu1 %v790_v12 }
  0x13   :  { %716 = vmatpush3.bf16.msra.mxu0 %v775_v5  ;;  %747 = vmatprep.subr.bf16.mxu1 %v791_v13 }
  0x14   :  { %717 = vmatprep.subr.bf16.mxu0 %v776_v6 }
  0x16   :  { %748 = vmatpush3.bf16.msra.mxu1 %v791_v13 }
  0x17   :  { %718 = vmatpush3.bf16.msra.mxu0 %v776_v6  ;;  %749 = vmatprep.subr.bf16.mxu1 %v792_v16 }
  0x18   :  { %719 = vmatprep.subr.bf16.mxu0 %v777_v9 }
  0x1a   :  { %750 = vmatpush3.bf16.msra.mxu1 %v792_v16 }
  0x1b   :  { %720 = vmatpush3.bf16.msra.mxu0 %v777_v9  ;;  %751 = vmatprep.subr.bf16.mxu1 %v793_v17 }
  0x1c   :  { %721 = vmatprep.subr.bf16.mxu0 %v778_v11 }
  0x1e   :  { %752 = vmatpush3.bf16.msra.mxu1 %v793_v17 }
  0x1f   :  { %722 = vmatpush3.bf16.msra.mxu0 %v778_v11  ;;  %753 = vmatprep.subr.bf16.mxu1 %v794_v23 }
  0x22   :  { %724 = vmatmul.mubr.bf16.vlgmr.msra.gmra.mrb[0].mxu0 %v780_v14  ;;  %754 = vmatpush3.bf16.msra.mxu1 %v794_v23 }
  0x23   :  { %727 = vmatprep.mubr.bf16.mxu0 %v781_v15 }
  0x2a   :  { %728 = vmatmul.mubr.bf16.gmra.mrb[4].mxu0 %v782_v18 }
  0x2b   :  { %731 = vmatprep.mubr.bf16.mxu0 %v783_v19 }
  0x32   :  { %732 = vmatmul.mubr.bf16.gmra.mrb[8].mxu0 %v784_v20 }
  0x33   :  { %735 = vmatprep.mubr.bf16.mxu0 %v785_v21 }
  0x3a   :  { %736 = vmatmul.mubr.bf16.gmra.mrb[12].mxu0 %v786_v22 }
  0xf5   :  { %v725_v24 = vpop.f32.mrb[0].mxu0 }
  0xf6   :  { %v180_v25 = vpop.f32.mrb[1].mxu0 }
  0xf7   :  { %v726_v26 = vpop.f32.mrb[2].mxu0 }
  0xf8   :  { %v244_v27 = vpack.c.bf16 %v726_v26, %v725_v24  ;;  %v183_v28 = vpop.f32.mrb[3].mxu0 }
  0xf9   :  { %v243_v29 = vpack.c.bf16 %v183_v28, %v180_v25 }
  0xfb   :  { %755 = vmatprep.mubr.bf16.mxu1 %v243_v29 }
  0xfc   :  { %756 = vmatmul.mubr.bf16.vlgmr.msra.gmra.mrb[0].mxu1 %v244_v27 }
  0xfd   :  { %v729_v30 = vpop.f32.mrb[4].mxu0 }
  0xfe   :  { %v196_v31 = vpop.f32.mrb[5].mxu0 }
  0xff   :  { %v730_v32 = vpop.f32.mrb[6].mxu0 }
 0x100   :  { %v246_v33 = vpack.c.bf16 %v730_v32, %v729_v30  ;;  %v199_v34 = vpop.f32.mrb[7].mxu0 }
 0x101   :  { %v245_v35 = vpack.c.bf16 %v199_v34, %v196_v31 }
 0x103   :  { %759 = vmatprep.mubr.bf16.mxu1 %v245_v35 }
 0x104   :  { %760 = vmatmul.mubr.bf16.gmra.mrb[4].mxu1 %v246_v33 }
 0x105   :  { %v733_v36 = vpop.f32.mrb[8].mxu0 }
 0x106   :  { %v212_v37 = vpop.f32.mrb[9].mxu0 }
 0x107   :  { %v734_v38 = vpop.f32.mrb[10].mxu0 }
 0x108   :  { %v248_v39 = vpack.c.bf16 %v734_v38, %v733_v36  ;;  %v215_v40 = vpop.f32.mrb[11].mxu0 }
 0x109   :  { %v247_v41 = vpack.c.bf16 %v215_v40, %v212_v37 }
 0x10b   :  { %763 = vmatprep.mubr.bf16.mxu1 %v247_v41 }
 0x10c   :  { %764 = vmatmul.mubr.bf16.gmra.mrb[8].mxu1 %v248_v39 }
 0x10d   :  { %v737_v42 = vpop.f32.mrb[12].mxu0 }
 0x10e   :  { %v228_v43 = vpop.f32.mrb[13].mxu0 }
 0x10f   :  { %v738_v44 = vpop.f32.mrb[14].mxu0 }
 0x110   :  { %v250_v45 = vpack.c.bf16 %v738_v44, %v737_v42  ;;  %v231_v46 = vpop.f32.mrb[15].mxu0 }
 0x111   :  { %v249_v47 = vpack.c.bf16 %v231_v46, %v228_v43 }
 0x113   :  { %767 = vmatprep.mubr.bf16.mxu1 %v249_v47 }
 0x114   :  { %768 = vmatmul.mubr.bf16.gmra.mrb[12].mxu1 %v250_v45 }
 0x1cf   :  { %v757_v51 = vpop.f32.mrb[0].mxu1 }
 0x1d0   :  { %v962_v52 = vadd.f32 %v757_v51, %v666_v50  ;;  %v356_v53 = vpop.f32.mrb[1].mxu1 }
 0x1d1   :  { %v964_v54 = vadd.f32 %v666_v50, %v356_v53  ;;  %v758_v55 = vpop.f32.mrb[2].mxu1 }
 0x1d2   :  { %v966_v56 = vadd.f32 %v758_v55, %v666_v50  ;;  %v359_v57 = vpop.f32.mrb[3].mxu1  ;;  %v424_v58 = vsel %vm421_vm0, %v962_v52, -1e+30 }
 0x1d3   :  { %v971_v59 = vadd.f32 %v666_v50, %v359_v57  ;;  %442 = vmax.xlane.f32.xlu1 %v424_v58  ;;  %v422_v60 = vsel %vm421_vm0, %v964_v54, -1e+30 }
 0x1d4   :  { %438 = vmax.xlane.f32.xlu0 %v422_v60  ;;  %v979_v61 = vsel %vm421_vm0, %v966_v56, -1e+30 }
 0x1d5   :  { %v423_v63 = vsel %vm421_vm0, %v971_v59, -1e+30 }
 0x1d7   :  { %444 = vmax.xlane.f32.xlu1 %v979_v61  ;;  %v761_v62 = vpop.f32.mrb[4].mxu1 }
 0x1d8   :  { %v985_v0 = vadd.f32 %v761_v62, %v666_v50  ;;  %440 = vmax.xlane.f32.xlu0 %v423_v63  ;;  %v372_v1 = vpop.f32.mrb[5].mxu1 }
 0x1d9   :  { %v762_v2 = vpop.f32.mrb[6].mxu1  ;;  %v992_v6 = vadd.f32 %v666_v50, %v372_v1 }
 0x1da   :  { %v987_v3 = vadd.f32 %v762_v2, %v666_v50  ;;  %v375_v4 = vpop.f32.mrb[7].mxu1  ;;  %v428_v5 = vsel %vm421_vm0, %v985_v0, -1e+30 }
 0x1db   :  { %v994_v7 = vadd.f32 %v666_v50, %v375_v4  ;;  %v1002_v10 = vsel %vm421_vm0, %v992_v6, -1e+30 }
 0x1dc   :  { %450 = vmax.xlane.f32.xlu0 %v428_v5  ;;  %v429_v8 = vsel %vm421_vm0, %v987_v3, -1e+30 }
 0x1dd   :  { %452 = vmax.xlane.f32.xlu1 %v429_v8  ;;  %v1010_v13 = vsel %vm421_vm0, %v994_v7, -1e+30 }
 0x1df   :  { %v765_v9 = vpop.f32.mrb[8].mxu1 }
 0x1e0   :  { %v1004_v11 = vadd.f32 %v765_v9, %v666_v50  ;;  %446 = vmax.xlane.f32.xlu0 %v1002_v10  ;;  %v388_v12 = vpop.f32.mrb[9].mxu1 }
 0x1e1   :  { %448 = vmax.xlane.f32.xlu1 %v1010_v13  ;;  %v766_v14 = vpop.f32.mrb[10].mxu1  ;;  %v1020_v18 = vadd.f32 %v666_v50, %v388_v12 }
 0x1e2   :  { %v1013_v15 = vadd.f32 %v766_v14, %v666_v50  ;;  %v391_v16 = vpop.f32.mrb[11].mxu1  ;;  %v1018_v17 = vsel %vm421_vm0, %v1004_v11, -1e+30 }
 0x1e3   :  { %v1022_v19 = vadd.f32 %v666_v50, %v391_v16  ;;  %v1034_v22 = vsel %vm421_vm0, %v1020_v18, -1e+30 }
 0x1e4   :  { %458 = vmax.xlane.f32.xlu0 %v1018_v17  ;;  %v1028_v20 = vsel %vm421_vm0, %v1013_v15, -1e+30 }
 0x1e5   :  { %460 = vmax.xlane.f32.xlu1 %v1028_v20  ;;  %v1040_v24 = vsel %vm421_vm0, %v1022_v19, -1e+30 }
 0x1e7   :  { %v769_v21 = vpop.f32.mrb[12].mxu1 }
 0x1e8   :  { %454 = vmax.xlane.f32.xlu0 %v1034_v22  ;;  %v404_v23 = vpop.f32.mrb[13].mxu1  ;;  %v1045_v28 = vadd.f32 %v769_v21, %v666_v50 }
 0x1e9   :  { %v1042_v25 = vadd.f32 %v666_v50, %v404_v23  ;;  %456 = vmax.xlane.f32.xlu1 %v1040_v24  ;;  %v770_v26 = vpop.f32.mrb[14].mxu1 }
 0x1ea   :  { %v407_v27 = vpop.f32.mrb[15].mxu1  ;;  %v1055_v31 = vadd.f32 %v770_v26, %v666_v50  ;;  %v1066_v33 = vsel %vm421_vm0, %v1045_v28, -1e+30 }
 0x1eb   :  { %v1047_v29 = vadd.f32 %v666_v50, %v407_v27  ;;  %v1052_v30 = vsel %vm421_vm0, %v1042_v25, -1e+30 }
 0x1ec   :  { %462 = vmax.xlane.f32.xlu0 %v1052_v30  ;;  %v1072_v34 = vsel %vm421_vm0, %v1055_v31, -1e+30 }
 0x1ed   :  { %v1060_v32 = vsel %vm421_vm0, %v1047_v29, -1e+30 }
 0x1ee   :  { %464 = vmax.xlane.f32.xlu1 %v1060_v32 }
 0x1f0   :  { %466 = vmax.xlane.f32.xlu0 %v1066_v33 }
 0x1f2   :  { %468 = vmax.xlane.f32.xlu1 %v1072_v34 }
 0x260   :  { %v1075_v35 = vpop.xlane.xlu1 %442 }
 0x261   :  { %v472_v36 = vsub.f32 %v424_v58, %v1075_v35  ;;  %v1078_v37 = vpop.xlane.xlu0 %438 }
 0x262   :  { %v470_v38 = vsub.f32 %v422_v60, %v1078_v37 }
 0x263   :  { %v490_v39 = vmul.f32 1.442695, %v472_v36 }
 0x264   :  { %v486_v40 = vmul.f32 1.442695, %v470_v38  ;;  %v1081_v41 = vpop.xlane.xlu1 %444 }
 0x265   :  { %795 = vpow2.f32 %v490_v39  ;;  %v473_v42 = vsub.f32 %v979_v61, %v1081_v41  ;;  %v1085_v43 = vpop.xlane.xlu0 %440 }
 0x266   :  { %v471_v44 = vsub.f32 %v423_v63, %v1085_v43  ;;  %797 = vpow2.f32 %v486_v40 }
 0x267   :  { %v492_v45 = vmul.f32 1.442695, %v473_v42 }
 0x268   :  { %v488_v46 = vmul.f32 1.442695, %v471_v44 }
 0x269   :  { %799 = vpow2.f32 %v492_v45  ;;  %v1088_v47 = vpop.xlane.xlu0 %450 }
 0x26a   :  { %v476_v48 = vsub.f32 %v428_v5, %v1088_v47  ;;  %v1091_v50 = vpop.xlane.xlu1 %452  ;;  %801 = vpow2.f32 %v488_v46 }
 0x26b   :  { %v477_v51 = vsub.f32 %v429_v8, %v1091_v50 }
 0x26c   :  { %v498_v53 = vmul.f32 1.442695, %v476_v48 }
 0x26d   :  { %v500_v55 = vmul.f32 1.442695, %v477_v51  ;;  %v1094_v57 = vpop.xlane.xlu0 %446 }
 0x26e   :  { %803 = vpow2.f32 %v498_v53  ;;  %v474_v58 = vsub.f32 %v1002_v10, %v1094_v57  ;;  %v1098_v60 = vpop.xlane.xlu1 %448 }
 0x26f   :  { %v796_v61 = vpop.eup %795  ;;  %805 = vpow2.f32 %v500_v55  ;;  %v475_v62 = vsub.f32 %v1010_v13, %v1098_v60 }
 0x270   :  { %v494_v63 = vmul.f32 1.442695, %v474_v58  ;;  %v520_v1 = vsel %vm421_vm0, %v796_v61, 0.0  ;;  %v798_v2 = vpop.eup %797 }
 0x271   :  { %v496_v4 = vmul.f32 1.442695, %v475_v62  ;;  %v1104_v5 = vpop.xlane.xlu0 %458  ;;  %538 = vadd.xlane.f32.xlu0 %v520_v1  ;;  %v518_v16 = vsel %vm421_vm0, %v798_v2, 0.0 }
 0x272   :  { %807 = vpow2.f32 %v494_v63  ;;  %v480_v8 = vsub.f32 %v1018_v17, %v1104_v5  ;;  %v1108_v9 = vpop.xlane.xlu1 %460 }
 0x273   :  { %v800_v10 = vpop.eup %799  ;;  %809 = vpow2.f32 %v496_v4  ;;  %v481_v12 = vsub.f32 %v1028_v20, %v1108_v9 }
 0x274   :  { %v506_v13 = vmul.f32 1.442695, %v480_v8  ;;  %v521_v14 = vsel %vm421_vm0, %v800_v10, 0.0  ;;  %v802_v21 = vpop.eup %801 }
 0x275   :  { %v508_v23 = vmul.f32 1.442695, %v481_v12  ;;  %v1116_v26 = vpop.xlane.xlu0 %454  ;;  %540 = vadd.xlane.f32.xlu1 %v521_v14  ;;  %534 = vadd.xlane.f32.xlu0 %v518_v16  ;;  %v519_v39 = vsel %vm421_vm0, %v802_v21, 0.0 }
 0x276   :  { %811 = vpow2.f32 %v506_v13  ;;  %v478_v17 = vsub.f32 %v1034_v22, %v1116_v26  ;;  %v1120_v27 = vpop.xlane.xlu1 %456 }
 0x277   :  { %813 = vpow2.f32 %v508_v23  ;;  %v479_v20 = vsub.f32 %v1040_v24, %v1120_v27 }
 0x278   :  { %v804_v36 = vpop.eup %803  ;;  %v502_v38 = vmul.f32 1.442695, %v478_v17 }
 0x279   :  { %v806_v40 = vpop.eup %805  ;;  %v504_v42 = vmul.f32 1.442695, %v479_v20  ;;  %536 = vadd.xlane.f32.xlu1 %v519_v39  ;;  %v1126_v44 = vpop.xlane.xlu0 %462  ;;  %v524_v45 = vsel %vm421_vm0, %v804_v36, 0.0 }
 0x27a   :  { %815 = vpow2.f32 %v502_v38  ;;  %v482_v22 = vsub.f32 %v1052_v30, %v1126_v44  ;;  %546 = vadd.xlane.f32.xlu0 %v524_v45  ;;  %v525_v53 = vsel %vm421_vm0, %v806_v40, 0.0 }
 0x27b   :  { %817 = vpow2.f32 %v504_v42  ;;  %v1132_v24 = vpop.xlane.xlu1 %464 }
 0x27c   :  { %v808_v46 = vpop.eup %807  ;;  %v510_v48 = vmul.f32 1.442695, %v482_v22  ;;  %v483_v51 = vsub.f32 %v1060_v32, %v1132_v24 }
 0x27d   :  { %v810_v55 = vpop.eup %809  ;;  %548 = vadd.xlane.f32.xlu1 %v525_v53  ;;  %v1138_v58 = vpop.xlane.xlu0 %466  ;;  %v522_v61 = vsel %vm421_vm0, %v808_v46, 0.0 }
 0x27e   :  { %819 = vpow2.f32 %v510_v48  ;;  %v512_v30 = vmul.f32 1.442695, %v483_v51  ;;  %v484_v62 = vsub.f32 %v1066_v33, %v1138_v58  ;;  %542 = vadd.xlane.f32.xlu0 %v522_v61  ;;  %v523_v4 = vsel %vm421_vm0, %v810_v55, 0.0 }
 0x27f   :  { %v1144_v63 = vpop.xlane.xlu1 %468 }
 0x280   :  { %v812_v1 = vpop.eup %811  ;;  %821 = vpow2.f32 %v512_v30  ;;  %v514_v32 = vmul.f32 1.442695, %v484_v62  ;;  %v485_v2 = vsub.f32 %v1072_v34, %v1144_v63 }
 0x281   :  { %v814_v8 = vpop.eup %813  ;;  %544 = vadd.xlane.f32.xlu1 %v523_v4  ;;  %v528_v10 = vsel %vm421_vm0, %v812_v1, 0.0 }
 0x282   :  { %823 = vpow2.f32 %v514_v32  ;;  %v516_v12 = vmul.f32 1.442695, %v485_v2  ;;  %554 = vadd.xlane.f32.xlu0 %v528_v10  ;;  %v529_v13 = vsel %vm421_vm0, %v814_v8, 0.0 }
 0x284   :  { %v816_v33 = vpop.eup %815  ;;  %825 = vpow2.f32 %v516_v12 }
 0x285   :  { %v818_v14 = vpop.eup %817  ;;  %556 = vadd.xlane.f32.xlu1 %v529_v13  ;;  %v526_v34 = vsel %vm421_vm0, %v816_v33, 0.0 }
 0x286   :  { %550 = vadd.xlane.f32.xlu0 %v526_v34  ;;  %v527_v21 = vsel %vm421_vm0, %v818_v14, 0.0 }
 0x288   :  { %v820_v16 = vpop.eup %819 }
 0x289   :  { %552 = vadd.xlane.f32.xlu1 %v527_v21  ;;  %v530_v23 = vsel %vm421_vm0, %v820_v16, 0.0 }
 0x28a   :  { %v822_v17 = vpop.eup %821  ;;  %558 = vadd.xlane.f32.xlu0 %v530_v23 }
 0x28b   :  { %v531_v20 = vsel %vm421_vm0, %v822_v17, 0.0 }
 0x28c   :  { %v824_v36 = vpop.eup %823 }
 0x28d   :  { %560 = vadd.xlane.f32.xlu1 %v531_v20  ;;  %v532_v38 = vsel %vm421_vm0, %v824_v36, 0.0 }
 0x28e   :  { %v826_v39 = vpop.eup %825  ;;  %562 = vadd.xlane.f32.xlu0 %v532_v38 }
 0x28f   :  { %v533_v40 = vsel %vm421_vm0, %v826_v39, 0.0 }
 0x291   :  { %564 = vadd.xlane.f32.xlu1 %v533_v40 }
 0x2fe   :  { %v539_v42 = vpop.xlane.xlu0 %538 }
 0x2ff   :  { %827 = vlog2.f32 %v539_v42 }
 0x302   :  { %v541_v45 = vpop.xlane.xlu1 %540  ;;  %v535_v22 = vpop.xlane.xlu0 %534 }
 0x303   :  { %829 = vlog2.f32 %v541_v45 }
 0x304   :  { %831 = vlog2.f32 %v535_v22 }
 0x306   :  { %v537_v46 = vpop.xlane.xlu1 %536 }
 0x307   :  { %833 = vlog2.f32 %v537_v46  ;;  %v547_v48 = vpop.xlane.xlu0 %546 }
 0x308   :  { %835 = vlog2.f32 %v547_v48 }
 0x309   :  { %v828_v51 = vpop.eup %827 }
 0x30a   :  { %v571_v53 = vmul.f32 0.6931472, %v828_v51  ;;  %v549_v55 = vpop.xlane.xlu1 %548 }
 0x30b   :  { %837 = vlog2.f32 %v549_v55  ;;  %v543_v61 = vpop.xlane.xlu0 %542 }
 0x30c   :  { %v600_v30 = vadd.f32 %v571_v53, %v1075_v35  ;;  %839 = vlog2.f32 %v543_v61 }
 0x30d   :  { %v830_v49 = vpop.eup %829 }
 0x30e   :  { %v832_v62 = vpop.eup %831  ;;  %v616_v1 = vsub.f32 %v962_v52, %v600_v30  ;;  %v573_v32 = vmul.f32 0.6931472, %v830_v49  ;;  %v545_v2 = vpop.xlane.xlu1 %544 }
 0x30f   :  { %v567_v4 = vmul.f32 0.6931472, %v832_v62  ;;  %841 = vlog2.f32 %v545_v2  ;;  %v555_v8 = vpop.xlane.xlu0 %554 }
 0x310   :  { %632 = vst [vmem:[%s1250_s4 + $0x10] sm:$0xff] %v616_v1  ;;  %v601_v10 = vadd.f32 %v573_v32, %v1081_v41  ;;  %843 = vlog2.f32 %v555_v8 }
 0x311   :  { %v834_v12 = vpop.eup %833  ;;  %v598_v35 = vadd.f32 %v567_v4, %v1078_v37 }
 0x312   :  { %v836_v33 = vpop.eup %835  ;;  %v617_v13 = vsub.f32 %v966_v56, %v601_v10  ;;  %v569_v14 = vmul.f32 0.6931472, %v834_v12  ;;  %v557_v52 = vpop.xlane.xlu1 %556 }
 0x313   :  { %v614_v34 = vsub.f32 %v964_v54, %v598_v35  ;;  %v579_v16 = vmul.f32 0.6931472, %v836_v33  ;;  %845 = vlog2.f32 %v557_v52  ;;  %v551_v21 = vpop.xlane.xlu0 %550 }
 0x314   :  { %633 = vst [vmem:[%s1250_s4 + $0x18] sm:$0xff] %v617_v13  ;;  %v599_v41 = vadd.f32 %v569_v14, %v1085_v43  ;;  %847 = vlog2.f32 %v551_v21 }
 0x315   :  { %v838_v23 = vpop.eup %837  ;;  %630 = vst [vmem:[%s1250_s4] sm:$0xff] %v614_v34  ;;  %v604_v56 = vadd.f32 %v579_v16, %v1088_v47 }
 0x316   :  { %v840_v37 = vpop.eup %839  ;;  %v615_v54 = vsub.f32 %v971_v59, %v599_v41  ;;  %v581_v17 = vmul.f32 0.6931472, %v838_v23  ;;  %v553_v20 = vpop.xlane.xlu1 %552 }
 0x317   :  { %v620_v36 = vsub.f32 %v985_v0, %v604_v56  ;;  %v575_v38 = vmul.f32 0.6931472, %v840_v37  ;;  %849 = vlog2.f32 %v553_v20  ;;  %v559_v39 = vpop.xlane.xlu0 %558 }
 0x318   :  { %631 = vst [vmem:[%s1250_s4 + $0x8] sm:$0xff] %v615_v54  ;;  %v605_v43 = vadd.f32 %v581_v17, %v1091_v50  ;;  %851 = vlog2.f32 %v559_v39 }
 0x319   :  { %v842_v40 = vpop.eup %841  ;;  %636 = vst [vmem:[%s1250_s4 + $0x30] sm:$0xff] %v620_v36  ;;  %v602_v59 = vadd.f32 %v575_v38, %v1094_v57 }
 0x31a   :  { %v844_v47 = vpop.eup %843  ;;  %v621_v0 = vsub.f32 %v987_v3, %v605_v43  ;;  %v577_v42 = vmul.f32 0.6931472, %v842_v40  ;;  %v561_v45 = vpop.xlane.xlu1 %560 }
 0x31b   :  { %v618_v22 = vsub.f32 %v992_v6, %v602_v59  ;;  %v587_v46 = vmul.f32 0.6931472, %v844_v47  ;;  %853 = vlog2.f32 %v561_v45  ;;  %v563_v48 = vpop.xlane.xlu0 %562 }
 0x31c   :  { %637 = vst [vmem:[%s1250_s4 + $0x38] sm:$0xff] %v621_v0  ;;  %v603_v50 = vadd.f32 %v577_v42, %v1098_v60  ;;  %855 = vlog2.f32 %v563_v48 }
 0x31d   :  { %v846_v51 = vpop.eup %845  ;;  %634 = vst [vmem:[%s1250_s4 + $0x20] sm:$0xff] %v618_v22  ;;  %v608_v3 = vadd.f32 %v587_v46, %v1104_v5 }
 0x31e   :  { %v848_v57 = vpop.eup %847  ;;  %v619_v6 = vsub.f32 %v994_v7, %v603_v50  ;;  %v589_v53 = vmul.f32 0.6931472, %v846_v51  ;;  %v565_v55 = vpop.xlane.xlu1 %564 }
 0x31f   :  { %v624_v61 = vsub.f32 %v1004_v11, %v608_v3  ;;  %v583_v30 = vmul.f32 0.6931472, %v848_v57  ;;  %857 = vlog2.f32 %v565_v55 }
 0x320   :  { %635 = vst [vmem:[%s1250_s4 + $0x28] sm:$0xff] %v619_v6  ;;  %v609_v60 = vadd.f32 %v589_v53, %v1108_v9 }
 0x321   :  { %v850_v49 = vpop.eup %849  ;;  %640 = vst [vmem:[%s1250_s4 + $0x50] sm:$0xff] %v624_v61  ;;  %v606_v5 = vadd.f32 %v583_v30, %v1116_v26 }
 0x322   :  { %v852_v7 = vpop.eup %851  ;;  %v625_v62 = vsub.f32 %v1013_v15, %v609_v60  ;;  %v585_v1 = vmul.f32 0.6931472, %v850_v49 }
 0x323   :  { %v622_v11 = vsub.f32 %v1020_v18, %v606_v5  ;;  %v591_v32 = vmul.f32 0.6931472, %v852_v7 }
 0x324   :  { %641 = vst [vmem:[%s1250_s4 + $0x58] sm:$0xff] %v625_v62  ;;  %v607_v9 = vadd.f32 %v585_v1, %v1120_v27 }
 0x325   :  { %v854_v2 = vpop.eup %853  ;;  %638 = vst [vmem:[%s1250_s4 + $0x40] sm:$0xff] %v622_v11  ;;  %v610_v26 = vadd.f32 %v591_v32, %v1126_v44 }
 0x326   :  { %v856_v4 = vpop.eup %855  ;;  %v623_v15 = vsub.f32 %v1022_v19, %v607_v9  ;;  %v593_v8 = vmul.f32 0.6931472, %v854_v2 }
 0x327   :  { %v626_v18 = vsub.f32 %v1042_v25, %v610_v26  ;;  %v595_v10 = vmul.f32 0.6931472, %v856_v4 }
 0x328   :  { %639 = vst [vmem:[%s1250_s4 + $0x48] sm:$0xff] %v623_v15  ;;  %v611_v27 = vadd.f32 %v593_v8, %v1132_v24 }
 0x329   :  { %v858_v12 = vpop.eup %857  ;;  %642 = vst [vmem:[%s1250_s4 + $0x60] sm:$0xff] %v626_v18  ;;  %v612_v44 = vadd.f32 %v595_v10, %v1138_v58 }
 0x32a   :  { %v627_v35 = vsub.f32 %v1047_v29, %v611_v27  ;;  %v597_v19 = vmul.f32 0.6931472, %v858_v12 }
 0x32b   :  { %v628_v33 = vsub.f32 %v1045_v28, %v612_v44 }
 0x32c   :  { %643 = vst [vmem:[%s1250_s4 + $0x68] sm:$0xff] %v627_v35  ;;  %v613_v25 = vadd.f32 %v597_v19, %v1144_v63 }
 0x32d   :  { %644 = vst [vmem:[%s1250_s4 + $0x70] sm:$0xff] %v628_v33 }
 0x32e   :  { %v629_v24 = vsub.f32 %v1055_v31, %v613_v25 }
 0x330   :  { %645 = vst [vmem:[%s1250_s4 + $0x78] sm:$0xff] %v629_v24 }

</bundles_post_ra>
